<compile_context>
chip_gen: v7x
topology: tpu7x:2x2x1
jax: 0.10.0
libtpu: 0.0.40
codegen_flags: <defaults>
</compile_context>

<pallas_src>
import jax
import jax.numpy as jnp
from jax import lax
from jax.experimental import pallas as pl
from jax.experimental.pallas import tpu as pltpu

_LANES = 128                       # lane-dense last dim
_CHUNK_ROWS = 512                  # in-kernel processing chunk (multiple of 32)
_TARGET_BLOCK_BYTES = 4 * 1024 * 1024   # ~4 MiB per input per grid step
_SMALL_N = 1 << 15                 # below this, fused XLA beats launch overhead

# Dtypes streamed into the kernel at native width (cast to f32 on-chip).
_NATIVE_DTYPES = (jnp.float32, jnp.bfloat16, jnp.uint8, jnp.int8,
                  jnp.int32, jnp.uint32)


def _round_up(a, b):
    return ((a + b - 1) // b) * b


def _make_partial_kernel(rows_valid, block_rows, chunk_rows, lanes, need_mask):
    """Kernel: one (block_rows, lanes) tile -> (1, 8, lanes) partial sums."""
    nchunks = block_rows // chunk_rows

    def kernel(x_ref, t_ref, o_ref):
        # Valid rows remaining in this block (static array size baked in).
        valid = rows_valid - pl.program_id(0) * block_rows
        if need_mask:
            # Hoisted once (not per chunk); compare against a shifting limit.
            row_iota = lax.broadcasted_iota(jnp.int32, (chunk_rows, lanes), 0)

        def body(c, acc):
            start = pl.multiple_of(c * chunk_rows, chunk_rows)
            xs = x_ref[pl.ds(start, chunk_rows), :].astype(jnp.float32)
            ts = t_ref[pl.ds(start, chunk_rows), :].astype(jnp.float32)
            d = ts - xs
            sq = d * d
            if need_mask:
                # Zero rows past the end of the real array (edge-block overhang).
                sq = jnp.where(row_iota < (valid - c * chunk_rows), sq, 0.0)
            # Reduce rows in groups of 8 sublanes: VPU adds only, no XLU;
            # the single cross-lane reduce happens once in the wrapper.
            part = sq.reshape(chunk_rows // 8, 8, lanes).sum(axis=0)
            return acc + part

        acc = lax.fori_loop(0, nchunks, body,
                            jnp.zeros((8, lanes), jnp.float32))
        o_ref[...] = acc[None]

    return kernel


def _normalize(inp, target, tp):
    if inp.shape != target.shape:
        raise AssertionError("shape mismatch")
    if inp.ndim == 2:
        inp = inp[None]
        target = target[None]
    assert inp.ndim == 3, "expected (B, H, W) or (H, W) inputs"
    _, H, W = inp.shape
    # Matches the PyTorch module: divides by shape[1]*shape[2] ONLY (not B).
    denom = float(H * W)
    scale = (1.0 / 256.0) if tp == "int" else 1.0
    return inp, target, denom, scale


def _to_kernel_dtype(a):
    # Stream supported dtypes natively; everything else (f64, i64, bool, f16)
    # is upcast once in the wrapper.
    if a.dtype in _NATIVE_DTYPES:
        return a
    return a.astype(jnp.float32)


def psnr_loss(inp, target, tp="float", *, use_kernel=None,
              target_block_bytes=_TARGET_BLOCK_BYTES):
    """JAX/Pallas equivalent of Loss.forward(input, target)."""
    inp, target, denom, scale = _normalize(inp, target, tp)
    n = int(inp.size)
    coef = (scale * scale) / denom     # folded: sum((s*d)^2) = s^2 * sum(d^2)

    if use_kernel is None:
        use_kernel = n >= _SMALL_N

    if not use_kernel:
        # Small-input fast path: fused XLA elementwise + reduce.
        d = target.astype(jnp.float32) - inp.astype(jnp.float32)
        mse = jnp.sum(d * d) * coef
        # NOTE: mse == 0 -> +inf, same as the PyTorch reference (no eps guard).
        return 10.0 * jnp.log10(1.0 / mse)

    x = _to_kernel_dtype(inp).reshape(-1)
    t = _to_kernel_dtype(target).reshape(-1)

    # Reshape to lane-dense (rows, 128).  A copy only happens in the rare
    # numel % 128 != 0 case (pad < 128 zeros); zeros contribute 0 to the sum.
    n_pad = _round_up(n, _LANES)
    if n_pad != n:
        # TODO(synk): ragged-tail copy; only triggers when numel % 128 != 0.
        x = jnp.pad(x, (0, n_pad - n))
        t = jnp.pad(t, (0, n_pad - n))
    rows = n_pad // _LANES
    x2 = x.reshape(rows, _LANES)
    t2 = t.reshape(rows, _LANES)

    # Block sizing: ~target_block_bytes per input per step, multiple of
    # _CHUNK_ROWS (hence of 32: ok for u8/bf16 sublane packing), and at least
    # 2 grid steps on medium/large inputs so v7x can use both TensorCores.
    itemsize = max(x.dtype.itemsize, t.dtype.itemsize)
    target_rows = max(_CHUNK_ROWS, target_block_bytes // (_LANES * itemsize))
    block_rows = min(target_rows, _round_up(rows, _CHUNK_ROWS))
    if rows > 2 * _CHUNK_ROWS and 2 * block_rows > rows:
        block_rows = _round_up(pl.cdiv(rows, 2), _CHUNK_ROWS)
    block_rows = _round_up(block_rows, _CHUNK_ROWS)
    num_blocks = pl.cdiv(rows, block_rows)
    need_mask = (rows % block_rows) != 0

    kernel = _make_partial_kernel(rows, block_rows, _CHUNK_ROWS, _LANES,
                                  need_mask)

    out_bytes = num_blocks * 8 * _LANES * 4
    cost = pl.CostEstimate(
        flops=3 * n,
        transcendentals=0,
        bytes_accessed=n * x.dtype.itemsize + n * t.dtype.itemsize + out_bytes,
    )

    partials = pl.pallas_call(
        kernel,
        out_shape=jax.ShapeDtypeStruct((num_blocks, 8, _LANES), jnp.float32),
        grid_spec=pltpu.PrefetchScalarGridSpec(
            num_scalar_prefetch=0,
            grid=(num_blocks,),
            in_specs=[
                pl.BlockSpec((block_rows, _LANES), lambda i: (i, 0)),
                pl.BlockSpec((block_rows, _LANES), lambda i: (i, 0)),
            ],
            out_specs=pl.BlockSpec((1, 8, _LANES), lambda i: (i, 0, 0)),
        ),
        compiler_params=pltpu.CompilerParams(
            dimension_semantics=("parallel",),     # independent partial sums
            vmem_limit_bytes=48 * 1024 * 1024,
        ),
        cost_estimate=cost,
    )(x2, t2)

    mse = jnp.sum(partials) * coef
    return 10.0 * jnp.log10(1.0 / mse)


def _reference(inp, target, tp="float"):
    """Pure-JAX reference mirroring the PyTorch forward."""
    if inp.ndim == 2:
        inp = inp[None]
        target = target[None]
    inp = inp.astype(jnp.float32)
    target = target.astype(jnp.float32)
    if tp == "int":
        inp = inp / 256.0
        target = target / 256.0
    mse = jnp.sum((target - inp) ** 2) / (inp.shape[1] * inp.shape[2])
    return 10.0 * jnp.log10(1.0 / mse)


if __name__ == "__main__":
    key = jax.random.PRNGKey(0)
    k1, k2, k3, k4 = jax.random.split(key, 4)

    # Case 1: small (B, H, W) float32, forced through the kernel
    # (single block with large masked overhang).
    B, H, W = 2, 16, 16
    inp1 = jax.random.uniform(k1, (B, H, W), dtype=jnp.float32)
    tgt1 = jnp.clip(inp1 + 0.05 * jax.random.normal(k2, (B, H, W), jnp.float32),
                    0.0, 1.0)
    out1 = jax.block_until_ready(psnr_loss(inp1, tgt1, tp="float",
                                           use_kernel=True))
    ref1 = _reference(inp1, tgt1, tp="float")
    assert jnp.allclose(out1, ref1, rtol=1e-4, atol=1e-4), (out1, ref1)

    # Case 2: native uint8 streaming, 'int' mode, multi-block grid with a
    # ragged (masked) last block.
    B2, H2, W2 = 4, 192, 256
    inp2f = jnp.floor(jax.random.uniform(k3, (B2, H2, W2), jnp.float32) * 255.0)
    tgt2f = jnp.clip(
        inp2f + jnp.round(8.0 * jax.random.normal(k4, (B2, H2, W2), jnp.float32)),
        0.0, 255.0)
    inp2 = inp2f.astype(jnp.uint8)
    tgt2 = tgt2f.astype(jnp.uint8)
    out2 = jax.block_until_ready(
        psnr_loss(inp2, tgt2, tp="int", use_kernel=True,
                  target_block_bytes=256 * 1024))
    ref2 = _reference(inp2f, tgt2f, tp="int")
    assert jnp.allclose(out2, ref2, rtol=1e-4, atol=1e-4), (out2, ref2)

    # Case 3: 2-D input path + small-input pure-JAX fast path.
    inp3 = jax.random.uniform(k1, (16, 16), dtype=jnp.float32)
    tgt3 = jax.random.uniform(k2, (16, 16), dtype=jnp.float32)
    out3 = jax.block_until_ready(psnr_loss(inp3, tgt3, tp="float"))
    ref3 = _reference(inp3, tgt3, tp="float")
    assert jnp.allclose(out3, ref3, rtol=1e-4, atol=1e-4), (out3, ref3)

    # Case 4: bf16 inputs, numel % 128 != 0 (exercises the rare pad fallback).
    inp4 = jax.random.uniform(k3, (3, 17, 19), dtype=jnp.float32).astype(jnp.bfloat16)
    tgt4 = jax.random.uniform(k4, (3, 17, 19), dtype=jnp.float32).astype(jnp.bfloat16)
    out4 = jax.block_until_ready(psnr_loss(inp4, tgt4, tp="float",
                                           use_kernel=True))
    ref4 = _reference(inp4.astype(jnp.float32), tgt4.astype(jnp.float32),
                      tp="float")
    assert jnp.allclose(out4, ref4, rtol=1e-3, atol=1e-3), (out4, ref4)

    print("KERNEL_OK")
</pallas_src>

<mosaic_0001>
module attributes {stable_mosaic.version = 11 : i64} {
  func.func @kernel(%arg0: i32, %arg1: memref<512x128xf32, #tpu.memory_space<vmem>>, %arg2: memref<512x128xf32, #tpu.memory_space<vmem>>, %arg3: memref<1x8x128xf32, #tpu.memory_space<vmem>>) attributes {dimension_semantics = [#tpu.dimension_semantics<parallel>], iteration_bounds = array<i64: 1>, scalar_prefetch = 0 : i64, scratch_operands = 0 : i64, tpu.core_type = #tpu.core_type<tc>, window_params = [{transform_indices = @transform_0, window_bounds = array<i64: 512, 128>}, {transform_indices = @transform_1, window_bounds = array<i64: 512, 128>}, {transform_indices = @transform_2, window_bounds = array<i64: 1, 8, 128>}]} {
    %c512_i32 = arith.constant 512 : i32
    %0 = arith.muli %arg0, %c512_i32 : i32
    %c4_i32 = arith.constant 4 : i32
    %1 = arith.subi %c4_i32, %0 : i32
    %2 = tpu.iota {dimensions = array<i32: 0>} : vector<512x128xi32>
    %cst = arith.constant 0.000000e+00 : f32
    %3 = vector.broadcast %cst : f32 to vector<8x128xf32>
    %c0_i32 = arith.constant 0 : i32
    %c512_i32_0 = arith.constant 512 : i32
    %4 = arith.muli %c0_i32, %c512_i32_0 : i32
    %5 = tpu.assume_multiple %4, 512 : i32
    %6 = arith.index_cast %5 : i32 to index
    %c0 = arith.constant 0 : index
    %7 = vector.load %arg1[%6, %c0] : memref<512x128xf32, #tpu.memory_space<vmem>>, vector<512x128xf32>
    %8 = arith.index_cast %5 : i32 to index
    %c0_1 = arith.constant 0 : index
    %9 = vector.load %arg2[%8, %c0_1] : memref<512x128xf32, #tpu.memory_space<vmem>>, vector<512x128xf32>
    %10 = arith.subf %9, %7 : vector<512x128xf32>
    %11 = arith.mulf %10, %10 : vector<512x128xf32>
    %c512_i32_2 = arith.constant 512 : i32
    %12 = arith.muli %c0_i32, %c512_i32_2 : i32
    %13 = arith.subi %1, %12 : i32
    %14 = vector.broadcast %13 : i32 to vector<512x128xi32>
    %15 = arith.cmpi slt, %2, %14 : vector<512x128xi32>
    %cst_3 = arith.constant 0.000000e+00 : f32
    %16 = vector.broadcast %cst_3 : f32 to vector<512x128xf32>
    %17 = arith.select %15, %11, %16 : vector<512x128xi1>, vector<512x128xf32>
    %18 = vector.shape_cast %17 : vector<512x128xf32> to vector<64x8x128xf32>
    %cst_4 = arith.constant dense<0.000000e+00> : vector<8x128xf32>
    %19 = vector.multi_reduction <add>, %18, %cst_4 [0] : vector<64x8x128xf32> to vector<8x128xf32>
    %20 = arith.addf %3, %19 : vector<8x128xf32>
    %c1_i32 = arith.constant 1 : i32
    %21 = vector.shape_cast %20 : vector<8x128xf32> to vector<1x8x128xf32>
    %c0_5 = arith.constant 0 : index
    %c0_6 = arith.constant 0 : index
    %c0_7 = arith.constant 0 : index
    %22 = vector.load %arg3[%c0_5, %c0_6, %c0_7] : memref<1x8x128xf32, #tpu.memory_space<vmem>>, vector<1x8x128xf32>
    tpu.vector_store %arg3[%c0_5, %c0_6, %c0_7], %21 {strides = array<i32>} : memref<1x8x128xf32, #tpu.memory_space<vmem>>, vector<1x8x128xf32>,
    return
  }
  func.func @transform_0(%arg0: i32) -> (i32, i32) {
    %c0_i32 = arith.constant 0 : i32
    %c0_i32_0 = arith.constant 0 : i32
    return %arg0, %c0_i32 : i32, i32
  }
  func.func @transform_1(%arg0: i32) -> (i32, i32) {
    %c0_i32 = arith.constant 0 : i32
    %c0_i32_0 = arith.constant 0 : i32
    return %arg0, %c0_i32 : i32, i32
  }
  func.func @transform_2(%arg0: i32) -> (i32, i32, i32) {
    %c0_i32 = arith.constant 0 : i32
    %c0_i32_0 = arith.constant 0 : i32
    %c0_i32_1 = arith.constant 0 : i32
    return %arg0, %c0_i32, %c0_i32_0 : i32, i32, i32
  }
}

</mosaic_0001>

<bundles_post_ra>
// kernel: tpu_custom_call.1
= control target key start
LH: loop header
LB: loop body
LE: loop exit
PB: predicated region body
PF: predicated region fallthrough
CT: control target
= control target key end

     0   :  { %7 = vsyncpa [#allocation3], 0  ;;  %s706_s0 = inlined_call_operand.hbm [shape: f32[4,128], index: 0, kind: input, shape index: {}]   ;;  %s707_s1 = inlined_call_operand.hbm [shape: f32[4,128], index: 1, kind: input, shape index: {}]   ;;  %s708_s2 = inlined_call_operand.hbm [shape: f32[1,8,128], index: 2, kind: output, shape index: {}]  }
   0x1   :  { %8 = vsyncpa [#allocation6], 0 }
   0x2   :  { %9 = vsyncpa [#allocation4], 0 }
   0x3   :  { %14 = vsyncadd [#allocation3], 8128  ;;  %s650_s9 = smov [#allocation2]   ;;  %s578_s13 = scalar_lea.hbm %s706_s0, 64 }
   0x4   :  { %s15_s10 = sshll.u32 %s650_s9, 4  ;;  %p579_p0 = scmp.ne.s32.totalorder %s706_s0, %s578_s13  ;;  %s16_s10 = int_to_ptr.vmem [resolvable:$true] %s15_s10 }
   0x5   :  { %p582_p1 = scmp.lt.u32.totalorder %s578_s13, %s706_s0 }
   0x7   :  { %p584_p2 = pnand %p582_p1, %p579_p0 }
   0x9   :  { %587 = shalt.err (!%p584_p2)
}
   0xa   :  { %s588_s18 = scalar_lea.vmem %s16_s10, 64  ;;  %s592_s19 = scalar_lea.vmem %s16_s10, 8192 }
   0xb   :  { %p589_p3 = scmp.ne.s32.totalorder %s16_s10, %s588_s18  ;;  %p593_p4 = scmp.lt.s32.totalorder %s16_s10, %s16_s10 }
   0xc   :  { %p594_p5 = scmp.lt.s32.totalorder %s592_s19, %s588_s18 }
   0xe   :  { %p595_p6 = por %p594_p5, %p593_p4 }
  0x10   :  { %p596_p7 = pnand %p595_p6, %p589_p3 }
  0x12   :  { %599 = shalt.err (!%p596_p7)
}
  0x13   :  { %s651_s20 = smov 64   ;;  %s652_s21 = smov 4  }
  0x14   :  { %21 = dma.hbm_to_vmem [thread:$0]  %s706_s0, 64, %s16_s10, [#allocation3], %s651_s20, %s651_s20, %s652_s21  }
  0x15   :  { %26 = vsyncadd [#allocation6], 8128  ;;  %s653_s24 = smov [#allocation5]   ;;  %s600_s28 = scalar_lea.hbm %s707_s1, 64 }
  0x16   :  { %s27_s25 = sshll.u32 %s653_s24, 4  ;;  %p601_p8 = scmp.ne.s32.totalorder %s707_s1, %s600_s28  ;;  %s28_s25 = int_to_ptr.vmem [resolvable:$true] %s27_s25 }
  0x17   :  { %p604_p9 = scmp.lt.u32.totalorder %s600_s28, %s707_s1 }
  0x19   :  { %p606_p10 = pnand %p604_p9, %p601_p8 }
  0x1b   :  { %609 = shalt.err (!%p606_p10)
}
  0x1c   :  { %s610_s5 = scalar_lea.vmem %s28_s25, 64  ;;  %s614_s0 = scalar_lea.vmem %s28_s25, 8192 }
  0x1d   :  { %p611_p11 = scmp.ne.s32.totalorder %s28_s25, %s610_s5  ;;  %p615_p12 = scmp.lt.s32.totalorder %s28_s25, %s28_s25 }
  0x1e   :  { %p616_p13 = scmp.lt.s32.totalorder %s614_s0, %s610_s5 }
  0x20   :  { %p617_p0 = por %p616_p13, %p615_p12 }
  0x22   :  { %p618_p1 = pnand %p617_p0, %p611_p11 }
  0x24   :  { %621 = shalt.err (!%p618_p1)
}
  0x25   :  { %33 = dma.hbm_to_vmem [thread:$0]  %s707_s1, 64, %s28_s25, [#allocation6], %s651_s20, %s651_s20, %s652_s21  }
  0x26   :  { %644 = dma.done.wait [#allocation3], 8192  }
  0x27   :  { %645 = vsyncadd [#allocation3], 4294959104 }
  0x28   :  { %646 = dma.done.wait [#allocation6], 8192  }
  0x29   :  { %647 = vsyncadd [#allocation6], 4294959104  ;;  %v42_v0 = vlaneseq  ;;  %v107_v2 = vld [vmem:[#allocation2] sm:$0xff]  ;;  %s654_s8 = smov [#allocation7]  }
  0x2a   :  { %v171_v3 = vld [vmem:[#allocation5] sm:$0xff]  ;;  %s563_s9 = sshll.u32 %s654_s8, 4  ;;  %s564_s9 = int_to_ptr.vmem [resolvable:$true] %s563_s9 }
  0x2b   :  { %v43_v1 = vshrl.u32 %v42_v0, 7  ;;  %v235_v4 = vsub.f32 %v171_v3, %v107_v2  ;;  %s622_s10 = scalar_lea.vmem %s564_s9, 128  ;;  %p627_p3 = scmp.lt.s32.totalorder %s564_s9, %s564_s9 }
  0x2c   :  { %p623_p2 = scmp.ne.s32.totalorder %s564_s9, %s622_s10  ;;  %p628_p4 = scmp.lt.s32.totalorder %s622_s10, %s622_s10 }
  0x2d   :  { %vm364_vm0 = vcmp.lt.s32.totalorder %v43_v1, 4  ;;  %v299_v5 = vmul.f32 %v235_v4, %v235_v4 }
  0x2e   :  { %p629_p5 = por %p628_p4, %p627_p3 }
  0x2f   :  { %v428_v6 = vsel %vm364_vm0, %v299_v5, 0.0 }
  0x30   :  { %556 = vst [vmem:[#allocation7] sm:$0xff] %v428_v6  ;;  %p630_p6 = pnand %p629_p5, %p623_p2 }
  0x32   :  { %633 = shalt.err (!%p630_p6)
}
  0x33   :  { %s634_s12 = scalar_lea.hbm %s708_s2, 128 }
  0x34   :  { %p635_p7 = scmp.ne.s32.totalorder %s708_s2, %s634_s12  ;;  %p638_p8 = scmp.lt.u32.totalorder %s634_s12, %s708_s2 }
  0x36   :  { %p640_p9 = pnand %p638_p8, %p635_p7 }
  0x38   :  { %643 = shalt.err (!%p640_p9)
}
  0x39   :  { %566 = dma.vmem_to_hbm [thread:$0]  %s564_s9, 128, %s708_s2, [#allocation4]  }
  0x3a   :  { %648 = dma.done.wait [#allocation4], 128  }
  0x3b   :  { %649 = vsyncadd [#allocation4], 4294967168 }
  0x3c   :  { %570 = vsyncpa [#allocation3], 1 }
  0x3d   :  { %571 = vsyncpa [#allocation6], 1 }
  0x3e   :  { %572 = vsyncpa [#allocation4], 1 }

</bundles_post_ra>
